<compile_context>
chip_gen: v5e
topology: v5e:2x2
jax: 0.10.0
libtpu: 0.0.40
codegen_flags: <defaults>
</compile_context>

<pallas_src>
import functools

import jax
import jax.numpy as jnp
import numpy as np
from jax.experimental import pallas as pl
from jax.experimental.pallas import tpu as pltpu


def _round_up(x, m):
    return (x + m - 1) // m * m


def _kim_kernel(kw_max, cols, emb_ref, wf_ref, bf_ref, wl_ref, bl_ref,
                mask_ref, out_ref, acc_ref):
    """One batch tile of the fused Kim-2014 forward.

    emb_ref : (TB, Sp, D)     bf16  embedded tokens (S padded to Sp, D unpadded)
    wf_ref  : (kw_max, D, FP) bf16  fused conv weights (branches packed by
                                    descending kernel width, zero-padded to FP)
    bf_ref  : (1, FP)         f32   fused conv bias
    wl_ref  : (FP, LP)        bf16  final linear weight (rows in packed order)
    bl_ref  : (1, LP)         f32   final linear bias
    mask_ref: (Sp, FP)        f32   1.0 where a time position is a valid conv
                                    window for that filter column, else 0.0
    out_ref : (TB, LP)        f32   logits (padded label dim; wrapper slices)
    acc_ref : (TB*Sp, FP)     f32   scratch accumulator (bounds live f32 set)
    """
    TB, Sp, D = emb_ref.shape
    FP = wf_ref.shape[-1]
    N = TB * Sp

    # Sp is a multiple of 16, so collapsing (TB, Sp) is a pure relabeling of
    # the bf16 (16, 128) tiles -- no relayout copy.
    x = emb_ref[...].reshape(N, D)

    # Fused full-width convolution: conv[s] = sum_t emb[s + t] @ W[t].
    # Tap 0 initialises the accumulator (all FP columns active); later taps
    # only multiply the prefix of columns whose branch still has a nonzero
    # weight (cols[t] is a static 128-multiple).  Each tap's result is shifted
    # with a sublane roll (XLU slot); wrapped / cross-batch / padded-S rows
    # only reach time positions that the validity mask zeroes below.
    acc_ref[...] = jnp.dot(x, wf_ref[0], preferred_element_type=jnp.float32)
    for t in range(1, kw_max):
        c = cols[t]
        y = jnp.dot(x, wf_ref[t, :, :c], preferred_element_type=jnp.float32)
        shifted = pltpu.roll(y, shift=N - t, axis=0)     # shifted[i] = y[i + t]
        if c == FP:
            acc_ref[...] += shifted
        else:
            acc_ref[:, :c] += shifted

    # Bias + ReLU (f32 VPU); zero invalid time positions (ReLU output >= 0, so
    # masking to 0 is max-pool safe); per-branch max over time.
    act = jnp.maximum(acc_ref[...] + bf_ref[...], 0.0)
    act = act.reshape(TB, Sp, FP) * mask_ref[...][None]
    pooled = jnp.max(act, axis=1)                        # (TB, FP)

    # TODO(synk): F.dropout(p=0.5) is identity at inference; training-mode
    # dropout is not implemented in-kernel.
    out = jnp.dot(pooled.astype(jnp.bfloat16), wl_ref[...],
                  preferred_element_type=jnp.float32) + bl_ref[...]
    out_ref[...] = out.astype(out_ref.dtype)


def _vmem_capacity_bytes():
    try:
        return int(pltpu.get_tpu_info().vmem_capacity_bytes)
    except Exception:
        return 64 << 20                  # conservative default (v7x per-core VMEM)


def _footprint(Sp, D, FP, LP, kw_max):
    """(fixed, per-batch-row) VMEM byte estimates."""
    fixed = 2 * (kw_max * D * FP * 2 + FP * 4 + FP * LP * 2 + LP * 4
                 + Sp * FP * 4)                       # resident weights + mask
    per_b = (2 * Sp * D * 2                           # emb tile, double-buffered bf16
             + Sp * FP * 4                            # f32 scratch accumulator
             + 3 * Sp * FP * 4                        # live f32 temps (y / roll / act)
             + 2 * 2 * LP * 4)                        # out tile (+ pooled)
    return fixed, per_b


def _choose_batch_tile(B, Sp, D, FP, LP, kw_max, budget):
    """Largest sublane-aligned batch tile fitting the per-generation budget."""
    fixed, per_b = _footprint(Sp, D, FP, LP, kw_max)
    tb = max(1, (budget - fixed) // per_b)
    if B <= 8:
        return B                                      # single step, full-dim block
    tb = int(min(tb, B))
    # Keep >= 2 grid steps: lets dimension_semantics=("parallel",) shard the
    # batch across v7x's two TensorCores and lets the pipeline hide the DMA.
    tb = min(tb, _round_up(B, 8) // 2)
    return max(8, (tb // 8) * 8)


def cnn_kim_forward(emb, conv_ws, conv_bs, linear_w_t, linear_b,
                    kernel_widths, feature_nums, *, batch_tile=None):
    """emb: (B, S, D) f32 embedded tokens.  Returns (B, label_num) f32 logits."""
    B, S, D = emb.shape
    label_num = linear_w_t.shape[1]
    kw_max = max(kernel_widths)
    sum_fn = sum(feature_nums)
    assert S >= kw_max, "sequence shorter than the widest kernel width"

    Sp = _round_up(S, 16)            # bf16 sublane tile => free (TB,Sp) collapse
    FP = _round_up(sum_fn, 128)      # fused filter (MXU N) dimension
    LP = _round_up(label_num, 128)   # lane-dense output store

    # --- fuse + pad parameters (host-side glue) -----------------------------
    # Branches packed by DESCENDING kernel width so the columns with a nonzero
    # weight at tap t form a prefix; later taps skip the zero columns on MXU.
    order = sorted(range(len(kernel_widths)), key=lambda i: -kernel_widths[i])
    orig_off = np.concatenate([[0], np.cumsum(feature_nums)]).astype(np.int64)

    wf = np.zeros((kw_max, D, FP), np.float32)
    bf = np.zeros((1, FP), np.float32)
    wl = np.zeros((FP, LP), np.float32)
    bl = np.zeros((1, LP), np.float32)
    mask = np.zeros((Sp, FP), np.float32)
    off = 0
    for i in order:
        kw, fn = int(kernel_widths[i]), int(feature_nums[i])
        wf[:kw, :, off:off + fn] = np.asarray(conv_ws[i], np.float32)
        bf[0, off:off + fn] = np.asarray(conv_bs[i], np.float32).reshape(-1)
        wl[off:off + fn, :label_num] = np.asarray(
            linear_w_t, np.float32)[orig_off[i]:orig_off[i] + fn]
        mask[:S - kw + 1, off:off + fn] = 1.0
        off += fn
    bl[0, :label_num] = np.asarray(linear_b, np.float32).reshape(-1)

    # Static per-tap active column counts (prefix of FP, 128-multiples).
    cols = tuple(
        min(FP, _round_up(max(sum(int(feature_nums[i]) for i in order
                                  if kernel_widths[i] > t), 1), 128))
        for t in range(kw_max))

    wf = jnp.asarray(wf, jnp.bfloat16)
    bf = jnp.asarray(bf, jnp.float32)
    wl = jnp.asarray(wl, jnp.bfloat16)
    bl = jnp.asarray(bl, jnp.float32)
    mask = jnp.asarray(mask, jnp.float32)

    # --- batch tiling (per-generation VMEM budget) ---------------------------
    cap = _vmem_capacity_bytes()
    budget = int(min(0.65 * cap, 96 << 20))
    tb = batch_tile if batch_tile is not None else _choose_batch_tile(
        B, Sp, D, FP, LP, kw_max, budget)
    Bp = _round_up(B, tb)

    # Cast to bf16 BEFORE padding; D itself is never padded in HBM.
    emb_p = jnp.pad(emb.astype(jnp.bfloat16),
                    ((0, Bp - B), (0, Sp - S), (0, 0)))

    fixed, per_b = _footprint(Sp, D, FP, LP, kw_max)
    vmem_bytes = int(min(max(fixed + tb * per_b + (2 << 20), 32 << 20),
                         int(0.9 * cap)))

    flops = 2 * Bp * Sp * D * sum(cols) + 2 * Bp * FP * LP
    bytes_accessed = (emb_p.size * 2 + wf.size * 2 + bf.size * 4 + wl.size * 2
                      + bl.size * 4 + mask.size * 4 + Bp * LP * 4)

    kernel = functools.partial(_kim_kernel, kw_max, cols)

    out = pl.pallas_call(
        kernel,
        out_shape=jax.ShapeDtypeStruct((Bp, LP), jnp.float32),
        grid=(Bp // tb,),
        in_specs=[
            pl.BlockSpec((tb, Sp, D), lambda b: (b, 0, 0)),
            pl.BlockSpec((kw_max, D, FP), lambda b: (0, 0, 0)),
            pl.BlockSpec((1, FP), lambda b: (0, 0)),
            pl.BlockSpec((FP, LP), lambda b: (0, 0)),
            pl.BlockSpec((1, LP), lambda b: (0, 0)),
            pl.BlockSpec((Sp, FP), lambda b: (0, 0)),
        ],
        out_specs=pl.BlockSpec((tb, LP), lambda b: (b, 0)),
        scratch_shapes=[pltpu.VMEM((tb * Sp, FP), jnp.float32)],
        compiler_params=pltpu.CompilerParams(
            dimension_semantics=("parallel",),
            vmem_limit_bytes=vmem_bytes),
        cost_estimate=pl.CostEstimate(
            flops=int(flops), transcendentals=0,
            bytes_accessed=int(bytes_accessed)),
    )(emb_p, wf, bf, wl, bl, mask)

    return out[:B, :label_num]


def _reference(emb, conv_ws, conv_bs, linear_w_t, linear_b, kernel_widths):
    """Pure-JAX f32 reference of the same math (for correctness check)."""
    B, S, D = emb.shape
    feats = []
    for w, b, kw in zip(conv_ws, conv_bs, kernel_widths):
        T = S - kw + 1
        fn = w.shape[-1]
        acc = jnp.zeros((B, T, fn), jnp.float32)
        for t in range(kw):
            acc = acc + jnp.einsum('bsd,df->bsf', emb[:, t:t + T, :], w[t])
        acc = jax.nn.relu(acc + b[0])
        feats.append(jnp.max(acc, axis=1))
    feat = jnp.concatenate(feats, axis=-1)
    return feat @ linear_w_t + linear_b[0]


if __name__ == "__main__":
    # --- module hyperparameters (small, consistent with __init__) ---
    embed_num = 20          # vocab size
    label_num = 3
    embed_dim = 300         # fixed in the module
    kernel_width = [2, 3]
    feature_num = [4, 5]
    batch, seq_len = 2, 8

    key = jax.random.PRNGKey(0)
    k_emb, k_ids, k_cw, k_cb, k_lw, k_lb = jax.random.split(key, 6)

    # Embedding table (initial_embeddings copied in, as in the PyTorch module).
    emb_table = jax.random.normal(k_emb, (embed_num, embed_dim),
                                  jnp.float32) * 0.1
    input_ids = jax.random.randint(k_ids, (batch, seq_len), 0, embed_num)

    # Conv parameters: PyTorch weight (fn, 1, kw*D) -> here (kw, D, fn).
    conv_ws, conv_bs = [], []
    kcw = jax.random.split(k_cw, len(kernel_width))
    kcb = jax.random.split(k_cb, len(kernel_width))
    for i, (kw, fn) in enumerate(zip(kernel_width, feature_num)):
        conv_ws.append(jax.random.normal(kcw[i], (kw, embed_dim, fn),
                                         jnp.float32) * 0.05)
        conv_bs.append(jax.random.normal(kcb[i], (1, fn), jnp.float32) * 0.05)

    # Linear: PyTorch weight (label_num, sum_fn) -> pass transposed.
    sum_fn = sum(feature_num)
    linear_w_t = jax.random.normal(k_lw, (sum_fn, label_num),
                                   jnp.float32) * 0.1
    linear_b = jax.random.normal(k_lb, (1, label_num), jnp.float32) * 0.1

    # Glue: embedding lookup in plain JAX (gather), then kernel.
    emb = jnp.take(emb_table, input_ids, axis=0)        # (B, S, D)

    out = cnn_kim_forward(emb, conv_ws, conv_bs, linear_w_t, linear_b,
                          kernel_width, feature_num)
    out = jax.block_until_ready(out)

    ref = _reference(emb, conv_ws, conv_bs, linear_w_t, linear_b,
                     kernel_width)
    assert out.shape == (batch, label_num)
    assert jnp.allclose(out, ref, rtol=2e-2, atol=2e-2), (out, ref)

    print("KERNEL_OK")
</pallas_src>

<mosaic_0001>
module attributes {stable_mosaic.version = 11 : i64} {
  func.func @_kim_kernel(%arg0: i32, %arg1: memref<2x16x300xbf16, #tpu.memory_space<vmem>>, %arg2: memref<3x300x128xbf16, #tpu.memory_space<vmem>>, %arg3: memref<1x128xf32, #tpu.memory_space<vmem>>, %arg4: memref<128x128xbf16, #tpu.memory_space<vmem>>, %arg5: memref<1x128xf32, #tpu.memory_space<vmem>>, %arg6: memref<16x128xf32, #tpu.memory_space<vmem>>, %arg7: memref<2x128xf32, #tpu.memory_space<vmem>>, %arg8: memref<32x128xf32, #tpu.memory_space<vmem>>) attributes {dimension_semantics = [#tpu.dimension_semantics<parallel>], iteration_bounds = array<i64: 1>, scalar_prefetch = 0 : i64, scratch_operands = 1 : i64, tpu.core_type = #tpu.core_type<tc>, window_params = [{transform_indices = @transform_0, window_bounds = array<i64: 2, 16, 300>}, {pipeline_mode = #tpu.pipeline_mode<synchronous>, transform_indices = @transform_1, window_bounds = array<i64: 3, 300, 128>}, {pipeline_mode = #tpu.pipeline_mode<synchronous>, transform_indices = @transform_2, window_bounds = array<i64: 1, 128>}, {pipeline_mode = #tpu.pipeline_mode<synchronous>, transform_indices = @transform_3, window_bounds = array<i64: 128, 128>}, {pipeline_mode = #tpu.pipeline_mode<synchronous>, transform_indices = @transform_4, window_bounds = array<i64: 1, 128>}, {pipeline_mode = #tpu.pipeline_mode<synchronous>, transform_indices = @transform_5, window_bounds = array<i64: 16, 128>}, {transform_indices = @transform_6, window_bounds = array<i64: 2, 128>}]} {
    %c0 = arith.constant 0 : index
    %c0_0 = arith.constant 0 : index
    %c0_1 = arith.constant 0 : index
    %0 = vector.load %arg1[%c0, %c0_0, %c0_1] : memref<2x16x300xbf16, #tpu.memory_space<vmem>>, vector<2x16x300xbf16>
    %1 = vector.shape_cast %0 : vector<2x16x300xbf16> to vector<32x300xbf16>
    %c0_2 = arith.constant 0 : index
    %c0_3 = arith.constant 0 : index
    %c0_4 = arith.constant 0 : index
    %2 = vector.load %arg2[%c0_2, %c0_3, %c0_4] : memref<3x300x128xbf16, #tpu.memory_space<vmem>>, vector<1x300x128xbf16>
    %3 = vector.shape_cast %2 : vector<1x300x128xbf16> to vector<300x128xbf16>
    %cst = arith.constant dense<0.000000e+00> : vector<32x128xf32>
    %4 = tpu.matmul %1, %3, %cst {dimension_numbers = #tpu.dot_dimension_numbers<[1], [0], [0], [1], [0, 0, 1, 1], [], []>} : vector<32x300xbf16>, vector<300x128xbf16>, vector<32x128xf32> -> vector<32x128xf32>
    %c0_5 = arith.constant 0 : index
    %c0_6 = arith.constant 0 : index
    %5 = vector.load %arg8[%c0_5, %c0_6] : memref<32x128xf32, #tpu.memory_space<vmem>>, vector<32x128xf32>
    tpu.vector_store %arg8[%c0_5, %c0_6], %4 {strides = array<i32>} : memref<32x128xf32, #tpu.memory_space<vmem>>, vector<32x128xf32>,
    %c1 = arith.constant 1 : index
    %c0_7 = arith.constant 0 : index
    %c0_8 = arith.constant 0 : index
    %6 = vector.load %arg2[%c1, %c0_7, %c0_8] : memref<3x300x128xbf16, #tpu.memory_space<vmem>>, vector<1x300x128xbf16>
    %7 = vector.shape_cast %6 : vector<1x300x128xbf16> to vector<300x128xbf16>
    %cst_9 = arith.constant dense<0.000000e+00> : vector<32x128xf32>
    %8 = tpu.matmul %1, %7, %cst_9 {dimension_numbers = #tpu.dot_dimension_numbers<[1], [0], [0], [1], [0, 0, 1, 1], [], []>} : vector<32x300xbf16>, vector<300x128xbf16>, vector<32x128xf32> -> vector<32x128xf32>
    %c31_i32 = arith.constant 31 : i32
    %9 = tpu.dynamic_rotate %8 by %c31_i32 dim 0 : vector<32x128xf32>, i32 -> vector<32x128xf32>
    %c0_10 = arith.constant 0 : index
    %c0_11 = arith.constant 0 : index
    %10 = vector.load %arg8[%c0_10, %c0_11] : memref<32x128xf32, #tpu.memory_space<vmem>>, vector<32x128xf32>
    %11 = arith.addf %10, %9 : vector<32x128xf32>
    %c0_12 = arith.constant 0 : index
    %c0_13 = arith.constant 0 : index
    %12 = vector.load %arg8[%c0_12, %c0_13] : memref<32x128xf32, #tpu.memory_space<vmem>>, vector<32x128xf32>
    tpu.vector_store %arg8[%c0_12, %c0_13], %11 {strides = array<i32>} : memref<32x128xf32, #tpu.memory_space<vmem>>, vector<32x128xf32>,
    %c2 = arith.constant 2 : index
    %c0_14 = arith.constant 0 : index
    %c0_15 = arith.constant 0 : index
    %13 = vector.load %arg2[%c2, %c0_14, %c0_15] : memref<3x300x128xbf16, #tpu.memory_space<vmem>>, vector<1x300x128xbf16>
    %14 = vector.shape_cast %13 : vector<1x300x128xbf16> to vector<300x128xbf16>
    %cst_16 = arith.constant dense<0.000000e+00> : vector<32x128xf32>
    %15 = tpu.matmul %1, %14, %cst_16 {dimension_numbers = #tpu.dot_dimension_numbers<[1], [0], [0], [1], [0, 0, 1, 1], [], []>} : vector<32x300xbf16>, vector<300x128xbf16>, vector<32x128xf32> -> vector<32x128xf32>
    %c30_i32 = arith.constant 30 : i32
    %16 = tpu.dynamic_rotate %15 by %c30_i32 dim 0 : vector<32x128xf32>, i32 -> vector<32x128xf32>
    %c0_17 = arith.constant 0 : index
    %c0_18 = arith.constant 0 : index
    %17 = vector.load %arg8[%c0_17, %c0_18] : memref<32x128xf32, #tpu.memory_space<vmem>>, vector<32x128xf32>
    %18 = arith.addf %17, %16 : vector<32x128xf32>
    %c0_19 = arith.constant 0 : index
    %c0_20 = arith.constant 0 : index
    %19 = vector.load %arg8[%c0_19, %c0_20] : memref<32x128xf32, #tpu.memory_space<vmem>>, vector<32x128xf32>
    tpu.vector_store %arg8[%c0_19, %c0_20], %18 {strides = array<i32>} : memref<32x128xf32, #tpu.memory_space<vmem>>, vector<32x128xf32>,
    %c0_21 = arith.constant 0 : index
    %c0_22 = arith.constant 0 : index
    %20 = vector.load %arg8[%c0_21, %c0_22] : memref<32x128xf32, #tpu.memory_space<vmem>>, vector<32x128xf32>
    %c0_23 = arith.constant 0 : index
    %c0_24 = arith.constant 0 : index
    %21 = vector.load %arg3[%c0_23, %c0_24] : memref<1x128xf32, #tpu.memory_space<vmem>>, vector<1x128xf32>
    %22 = vector.broadcast %21 : vector<1x128xf32> to vector<32x128xf32>
    %23 = arith.addf %20, %22 : vector<32x128xf32>
    %cst_25 = arith.constant 0.000000e+00 : f32
    %24 = vector.broadcast %cst_25 : f32 to vector<32x128xf32>
    %25 = arith.maximumf %23, %24 : vector<32x128xf32>
    %26 = vector.shape_cast %25 : vector<32x128xf32> to vector<2x16x128xf32>
    %c0_26 = arith.constant 0 : index
    %c0_27 = arith.constant 0 : index
    %27 = vector.load %arg6[%c0_26, %c0_27] : memref<16x128xf32, #tpu.memory_space<vmem>>, vector<16x128xf32>
    %28 = vector.shape_cast %27 : vector<16x128xf32> to vector<1x16x128xf32>
    %29 = vector.broadcast %28 : vector<1x16x128xf32> to vector<2x16x128xf32>
    %30 = arith.mulf %26, %29 : vector<2x16x128xf32>
    %cst_28 = arith.constant dense<0xFF800000> : vector<2x128xf32>
    %31 = vector.multi_reduction <maximumf>, %30, %cst_28 [1] : vector<2x16x128xf32> to vector<2x128xf32>
    %32 = arith.truncf %31 : vector<2x128xf32> to vector<2x128xbf16>
    %c0_29 = arith.constant 0 : index
    %c0_30 = arith.constant 0 : index
    %33 = vector.load %arg4[%c0_29, %c0_30] : memref<128x128xbf16, #tpu.memory_space<vmem>>, vector<128x128xbf16>
    %cst_31 = arith.constant dense<0.000000e+00> : vector<2x128xf32>
    %34 = tpu.matmul %32, %33, %cst_31 {dimension_numbers = #tpu.dot_dimension_numbers<[1], [0], [0], [1], [0, 0, 1, 1], [], []>} : vector<2x128xbf16>, vector<128x128xbf16>, vector<2x128xf32> -> vector<2x128xf32>
    %c0_32 = arith.constant 0 : index
    %c0_33 = arith.constant 0 : index
    %35 = vector.load %arg5[%c0_32, %c0_33] : memref<1x128xf32, #tpu.memory_space<vmem>>, vector<1x128xf32>
    %36 = vector.broadcast %35 : vector<1x128xf32> to vector<2x128xf32>
    %37 = arith.addf %34, %36 : vector<2x128xf32>
    %c0_34 = arith.constant 0 : index
    %c0_35 = arith.constant 0 : index
    %38 = vector.load %arg7[%c0_34, %c0_35] : memref<2x128xf32, #tpu.memory_space<vmem>>, vector<2x128xf32>
    tpu.vector_store %arg7[%c0_34, %c0_35], %37 {strides = array<i32>} : memref<2x128xf32, #tpu.memory_space<vmem>>, vector<2x128xf32>,
    return
  }
  func.func @transform_0(%arg0: i32) -> (i32, i32, i32) {
    %c0_i32 = arith.constant 0 : i32
    %c0_i32_0 = arith.constant 0 : i32
    %c0_i32_1 = arith.constant 0 : i32
    return %arg0, %c0_i32, %c0_i32_0 : i32, i32, i32
  }
  func.func @transform_1(%arg0: i32) -> (i32, i32, i32) {
    %c0_i32 = arith.constant 0 : i32
    %c0_i32_0 = arith.constant 0 : i32
    %c0_i32_1 = arith.constant 0 : i32
    %c0_i32_2 = arith.constant 0 : i32
    return %c0_i32, %c0_i32_0, %c0_i32_1 : i32, i32, i32
  }
  func.func @transform_2(%arg0: i32) -> (i32, i32) {
    %c0_i32 = arith.constant 0 : i32
    %c0_i32_0 = arith.constant 0 : i32
    %c0_i32_1 = arith.constant 0 : i32
    return %c0_i32, %c0_i32_0 : i32, i32
  }
  func.func @transform_3(%arg0: i32) -> (i32, i32) {
    %c0_i32 = arith.constant 0 : i32
    %c0_i32_0 = arith.constant 0 : i32
    %c0_i32_1 = arith.constant 0 : i32
    return %c0_i32, %c0_i32_0 : i32, i32
  }
  func.func @transform_4(%arg0: i32) -> (i32, i32) {
    %c0_i32 = arith.constant 0 : i32
    %c0_i32_0 = arith.constant 0 : i32
    %c0_i32_1 = arith.constant 0 : i32
    return %c0_i32, %c0_i32_0 : i32, i32
  }
  func.func @transform_5(%arg0: i32) -> (i32, i32) {
    %c0_i32 = arith.constant 0 : i32
    %c0_i32_0 = arith.constant 0 : i32
    %c0_i32_1 = arith.constant 0 : i32
    return %c0_i32, %c0_i32_0 : i32, i32
  }
  func.func @transform_6(%arg0: i32) -> (i32, i32) {
    %c0_i32 = arith.constant 0 : i32
    %c0_i32_0 = arith.constant 0 : i32
    return %arg0, %c0_i32 : i32, i32
  }
}

</mosaic_0001>

<bundles_post_ra>
// kernel: tpu_custom_call.1
= control target key start
LH: loop header
LB: loop body
LE: loop exit
PB: predicated region body
PF: predicated region fallthrough
CT: control target
= control target key end

     0   :  { %11 = vsyncpa [#allocation4], 0  ;;  %s1606_s0 = inlined_call_operand.hbm [shape: bf16[2,16,300], index: 0, kind: input, shape index: {}]   ;;  %s1607_s1 = inlined_call_operand.hbm [shape: bf16[3,300,128], index: 1, kind: input, shape index: {}]   ;;  %s1608_s2 = inlined_call_operand.vmem [shape: f32[1,128], index: 2, kind: input, shape index: {}]   ;;  %s1609_s3 = inlined_call_operand.hbm [shape: bf16[128,128], index: 3, kind: input, shape index: {}]   ;;  %s1610_s4 = inlined_call_operand.vmem [shape: f32[1,128], index: 4, kind: input, shape index: {}]   ;;  %s1611_s5 = inlined_call_operand.hbm [shape: f32[16,128], index: 5, kind: input, shape index: {}]   ;;  %s1612_s6 = inlined_call_operand.hbm [shape: f32[2,128], index: 6, kind: output, shape index: {}]  }
   0x1   :  { %12 = vsyncpa [#allocation7], 0 }
   0x2   :  { %13 = vsyncpa [#allocation10], 0  ;;  %s32_s23 = sshll.u32 %s1607_s1, 4  ;;  %s33_s23 = int_to_ptr.hbm [resolvable:$true] %s32_s23 }
   0x3   :  { %14 = vsyncpa [#allocation5], 0  ;;  %s1466_s24 = smov [#allocation6]   ;;  %s19_s28 = sshll.u32 %s1606_s0, 4  ;;  %s20_s28 = int_to_ptr.hbm [resolvable:$true] %s19_s28 }
   0x4   :  { %s34_s25 = sshll.u32 %s1466_s24, 4  ;;  %s1467_s29 = smov 64   ;;  %s35_s25 = int_to_ptr.vmem [resolvable:$true] %s34_s25 }
   0x5   :  { %s1468_s30 = smov 4   ;;  %s1469_s7 = smov [#allocation3]  }
   0x6   :  { %40 = dma.hbm_to_vmem [thread:$0]  %s33_s23, 7296, %s35_s25, [#allocation7], %s1467_s29, %s1467_s29, %s1468_s30  }
   0x7   :  { %s21_s8 = sshll.u32 %s1469_s7, 4  ;;  %s1470_s9 = smov 192   ;;  %s22_s8 = int_to_ptr.vmem [resolvable:$true] %s21_s8 }
   0x8   :  { %s1471_s10 = smov 12   ;;  %s47_s12 = sshll.u32 %s1609_s3, 4  ;;  %s48_s12 = int_to_ptr.hbm [resolvable:$true] %s47_s12 }
   0x9   :  { %27 = dma.hbm_to_vmem [thread:$0]  %s20_s28, 768, %s22_s8, [#allocation4], %s1470_s9, %s1470_s9, %s1471_s10  }
   0xa   :  { %s1472_s13 = smov [#allocation8]   ;;  %s62_s16 = sshll.u32 %s1611_s5, 4  ;;  %s63_s16 = int_to_ptr.hbm [resolvable:$true] %s62_s16 }
   0xb   :  { %s49_s14 = sshll.u32 %s1472_s13, 4  ;;  %s1473_s17 = smov [#allocation9]   ;;  %s50_s14 = int_to_ptr.vmem [resolvable:$true] %s49_s14 }
   0xc   :  { %55 = dma.hbm_to_vmem [thread:$0]  %s48_s12, 1024, %s50_s14, [#allocation7], %s1467_s29, %s1467_s29, %s1468_s30  }
   0xd   :  { %s64_s18 = sshll.u32 %s1473_s17, 4  ;;  %s1474_s19 = smov 128   ;;  %s65_s18 = int_to_ptr.vmem [resolvable:$true] %s64_s18 }
   0xe   :  { %s1475_s20 = smov 8  }
   0xf   :  { %70 = dma.hbm_to_vmem [thread:$0]  %s63_s16, 256, %s65_s18, [#allocation10], %s1474_s19, %s1474_s19, %s1475_s20  }
  0x10   :  { %1458 = dma.done.wait [#allocation4], 768  }
  0x11   :  { %1459 = vsyncadd [#allocation4], 4294966528 }
  0x12   :  { %1460 = dma.done.wait [#allocation7], 8320  }
  0x13   :  { %1461 = vsyncadd [#allocation7], 4294958976 }
  0x14   :  { %1462 = dma.done.wait [#allocation10], 256  }
  0x15   :  { %1463 = vsyncadd [#allocation10], 4294967040  ;;  %v1267_v0 = vld [vmem:[#allocation6 + $0x38] sm:$0xff]  ;;  %v1062_v2 = vld [vmem:[#allocation6 + $0x90] sm:$0xf]  ;;  %vm284_vm0 = vcmask 1045504  }
  0x16   :  { %v1275_v1 = vld [vmem:[#allocation6 + $0x78] sm:$0xff]  ;;  %v1278_v3 = vld [vmem:[#allocation6 + $0x90] sm:$0x30]  ;;  %288 = vmatpush.bf16.msra.mxu0 %v1267_v0  ;;  %v1285_v8 = vld [vmem:[#allocation6 + $0xc8] sm:$0xff]  ;;  %vm277_vm1 = vcmask 359424   ;;  %vm879_vm4 = vcmask 1041409  }
  0x17   :  { %v1286_v4 = vld [vmem:[#allocation6 + $0xd0] sm:$0xff]  ;;  %307 = vmatpush.bf16.msra.mxu1 %v1275_v1  ;;  %v1063_v5 = vor.u32 %v1278_v3, %v1062_v2  ;;  %v1277_v10 = vld [vmem:[#allocation6 + $0x88] sm:$0xff]  ;;  %v1284_v13 = vld [vmem:[#allocation6 + $0xc0] sm:$0xff]  ;;  %s1476_s22 = smov [#allocation11]   ;;  %s952_s26 = sshll.u32 %s1612_s6, 4  ;;  %s953_s26 = int_to_ptr.hbm [resolvable:$true] %s952_s26 }
  0x18   :  { %v1266_v6 = vld [vmem:[#allocation6 + $0x30] sm:$0xff]  ;;  %504 = vmatpush.bf16.msra.mxu3 %v1286_v4  ;;  %v1265_v11 = vld [vmem:[#allocation6 + $0x28] sm:$0xff]  ;;  %v1276_v14 = vld [vmem:[#allocation6 + $0x80] sm:$0xff]  ;;  %s950_s23 = sshll.u32 %s1476_s22, 4  ;;  %s951_s23 = int_to_ptr.vmem [resolvable:$true] %s950_s23 }
  0x19   :  { %v1274_v7 = vld [vmem:[#allocation6 + $0x70] sm:$0xff]  ;;  %v286_v9 = vsel %vm284_vm0, %v1063_v5, 0  ;;  %v1273_v12 = vld [vmem:[#allocation6 + $0x68] sm:$0xff]  ;;  %v974_v15 = vld [vmem:[#allocation3 + $0x8] sm:$0xf] }
  0x1a   :  { %331 = vmatpush.bf16.msra.mxu2 %v286_v9  ;;  %289 = vmatpush.bf16.msra.mxu0 %v1266_v6  ;;  %v1256_v16 = vld [vmem:[#allocation3 + $0x10] sm:$0xf0]  ;;  %v1294_v19 = vld [vmem:[#allocation6 + $0x110] sm:$0xff]  ;;  %v1283_v20 = vld [vmem:[#allocation6 + $0xb8] sm:$0xff] }
  0x1b   :  { %308 = vmatpush.bf16.msra.mxu1 %v1274_v7  ;;  %v1264_v17 = vld [vmem:[#allocation6 + $0x20] sm:$0xff]  ;;  %v1525_v21 = vor.u32 %v1256_v16, %v974_v15  ;;  %v1263_v22 = vld [vmem:[#allocation6 + $0x18] sm:$0xff]  ;;  %v1293_v24 = vld [vmem:[#allocation6 + $0x108] sm:$0xff] }
  0x1c   :  { %505 = vmatpush.bf16.msra.mxu3 %v1285_v8  ;;  %v1272_v18 = vld [vmem:[#allocation6 + $0x60] sm:$0xff]  ;;  %v1271_v23 = vld [vmem:[#allocation6 + $0x58] sm:$0xff]  ;;  %v1282_v25 = vld [vmem:[#allocation6 + $0xb0] sm:$0xff] }
  0x1d   :  { %v1262_v26 = vld [vmem:[#allocation6 + $0x10] sm:$0xff]  ;;  %v1292_v28 = vld [vmem:[#allocation6 + $0x100] sm:$0xff]  ;;  %v1281_v29 = vld [vmem:[#allocation6 + $0xa8] sm:$0xff] }
  0x1e   :  { %332 = vmatpush.bf16.msra.mxu2 %v1277_v10  ;;  %290 = vmatpush.bf16.msra.mxu0 %v1265_v11  ;;  %v1270_v27 = vld [vmem:[#allocation6 + $0x50] sm:$0xff]  ;;  %v1261_v30 = vld [vmem:[#allocation6 + $0x8] sm:$0xff]  ;;  %v1291_v32 = vld [vmem:[#allocation6 + $0xf8] sm:$0xff] }
  0x1f   :  { %309 = vmatpush.bf16.msra.mxu1 %v1273_v12  ;;  %v1269_v31 = vld [vmem:[#allocation6 + $0x48] sm:$0xff]  ;;  %v1280_v33 = vld [vmem:[#allocation6 + $0xa0] sm:$0xff]  ;;  %v986_v36 = vld [vmem:[#allocation3 + $0x20] sm:$0xf] }
  0x20   :  { %506 = vmatpush.bf16.msra.mxu3 %v1284_v13  ;;  %v1260_v34 = vld [vmem:[#allocation6] sm:$0xff]  ;;  %v1259_v37 = vld [vmem:[#allocation3 + $0x28] sm:$0xf0]  ;;  %v966_v38 = vld [vmem:[#allocation3] sm:$0xf] }
  0x21   :  { %v1268_v35 = vld [vmem:[#allocation6 + $0x40] sm:$0xff]  ;;  %v1140_v39 = vld [vmem:[#allocation6 + $0x128] sm:$0xf]  ;;  %v1297_v40 = vld [vmem:[#allocation6 + $0x128] sm:$0x30]  ;;  %v1529_v46 = vor.u32 %v1259_v37, %v986_v36 }
  0x22   :  { %333 = vmatpush.bf16.msra.mxu2 %v1276_v14  ;;  %291 = vmatpush.bf16.msra.mxu0 %v1264_v17  ;;  %v1255_v41 = vld [vmem:[#allocation3 + $0x8] sm:$0xf0]  ;;  %v1254_v42 = vld [vmem:[#allocation3 + $0x4] sm:$0xf]  ;;  %v968_v43 = vld [vmem:[#allocation3 + $0xc] sm:$0xf0]  ;;  %v1141_v48 = vor.u32 %v1297_v40, %v1140_v39 }
  0x23   :  { %310 = vmatpush.bf16.msra.mxu1 %v1272_v18  ;;  %v1290_v44 = vld [vmem:[#allocation6 + $0xf0] sm:$0xff]  ;;  %v1279_v45 = vld [vmem:[#allocation6 + $0x98] sm:$0xff]  ;;  %v1313_v47 = vld [vmem:[#allocation6 + $0x1a8] sm:$0xff]  ;;  %v1531_v49 = vor.u32 %v1255_v41, %v966_v38  ;;  %v1533_v50 = vor.u32 %v1254_v42, %v968_v43 }
  0x24   :  { %507 = vmatpush.bf16.msra.mxu3 %v1283_v20  ;;  %v1305_v51 = vld [vmem:[#allocation6 + $0x168] sm:$0xff]  ;;  %v1312_v53 = vld [vmem:[#allocation6 + $0x1a0] sm:$0xff]  ;;  %v502_v54 = vsel %vm284_vm0, %v1141_v48, 0  ;;  %v1311_v60 = vld [vmem:[#allocation6 + $0x198] sm:$0xff] }
  0x25   :  { %1064 = vmatmul.msk.bf16.vlgmr.msra.gmra.mxu2 %vm277_vm1, %v1525_v21  ;;  %v1289_v52 = vld [vmem:[#allocation6 + $0xe8] sm:$0xff]  ;;  %v1218_v55 = vld [vmem:[#allocation6 + $0x1c0] sm:$0xf]  ;;  %v1316_v56 = vld [vmem:[#allocation6 + $0x1c0] sm:$0x30] }
  0x26   :  { %523 = vmatpush.bf16.msrb.mxu2 %v1294_v19  ;;  %292 = vmatpush.bf16.msra.mxu0 %v1263_v22  ;;  %v1304_v57 = vld [vmem:[#allocation6 + $0x160] sm:$0xff]  ;;  %v1219_v61 = vor.u32 %v1316_v56, %v1218_v55  ;;  %v1303_v62 = vld [vmem:[#allocation6 + $0x158] sm:$0xff]  ;;  %v1310_v1 = vld [vmem:[#allocation6 + $0x190] sm:$0xff] }
  0x27   :  { %311 = vmatpush.bf16.msra.mxu1 %v1271_v23  ;;  %v1288_v58 = vld [vmem:[#allocation6 + $0xe0] sm:$0xff]  ;;  %v1287_v63 = vld [vmem:[#allocation6 + $0xd8] sm:$0xff]  ;;  %v978_v3 = vld [vmem:[#allocation3 + $0x18] sm:$0xf] }
  0x28   :  { %508 = vmatpush.bf16.msra.mxu3 %v1282_v25  ;;  %v1296_v59 = vld [vmem:[#allocation6 + $0x120] sm:$0xff]  ;;  %v1295_v0 = vld [vmem:[#allocation6 + $0x118] sm:$0xff]  ;;  %v737_v2 = vsel %vm284_vm0, %v1219_v61, 0  ;;  %v1258_v4 = vld [vmem:[#allocation3 + $0x20] sm:$0xf0] }
  0x29   :  { %v1257_v5 = vld [vmem:[#allocation3 + $0x1c] sm:$0xf]  ;;  %v980_v6 = vld [vmem:[#allocation3 + $0x24] sm:$0xf0]  ;;  %v1302_v7 = vld [vmem:[#allocation6 + $0x150] sm:$0xff]  ;;  %v979_v9 = vor.u32 %v1258_v4, %v978_v3 }
  0x2a   :  { %524 = vmatpush.bf16.msrb.mxu2 %v1293_v24  ;;  %293 = vmatpush.bf16.msra.mxu0 %v1262_v26  ;;  %v1309_v8 = vld [vmem:[#allocation6 + $0x188] sm:$0xff]  ;;  %v983_v10 = vor.u32 %v1257_v5, %v980_v6  ;;  %v1315_v11 = vld [vmem:[#allocation6 + $0x1b8] sm:$0xff]  ;;  %v1308_v13 = vld [vmem:[#allocation6 + $0x180] sm:$0xff] }
  0x2b   :  { %312 = vmatpush.bf16.msra.mxu1 %v1270_v27  ;;  %v1301_v12 = vld [vmem:[#allocation6 + $0x148] sm:$0xff]  ;;  %v1314_v14 = vld [vmem:[#allocation6 + $0x1b0] sm:$0xff]  ;;  %v1300_v15 = vld [vmem:[#allocation6 + $0x140] sm:$0xff] }
  0x2c   :  { %509 = vmatpush.bf16.msra.mxu3 %v1281_v29  ;;  %v1307_v16 = vld [vmem:[#allocation6 + $0x178] sm:$0xff]  ;;  %v1306_v18 = vld [vmem:[#allocation6 + $0x170] sm:$0xff]  ;;  %v1320_v6 = vld [vmem:[#allocation8 + $0x18] sm:$0xff] }
  0x2d   :  { %v1299_v17 = vld [vmem:[#allocation6 + $0x138] sm:$0xff]  ;;  %v1298_v19 = vld [vmem:[#allocation6 + $0x130] sm:$0xff] }
  0x2e   :  { %525 = vmatpush.bf16.msrb.mxu2 %v1292_v28  ;;  %294 = vmatpush.bf16.msra.mxu0 %v1261_v30 }
  0x2f   :  { %313 = vmatpush.bf16.msra.mxu1 %v1269_v31 }
  0x30   :  { %510 = vmatpush.bf16.msra.mxu3 %v1280_v33 }
  0x32   :  { %526 = vmatpush.bf16.msrb.mxu2 %v1291_v32  ;;  %295 = vmatpush.bf16.msra.mxu0 %v1260_v34 }
  0x33   :  { %314 = vmatpush.bf16.msra.mxu1 %v1268_v35 }
  0x34   :  { %511 = vmatpush.bf16.msra.mxu3 %v1279_v45  ;;  %v1323_v45 = vld [vmem:[#allocation8 + $0x30] sm:$0xff] }
  0x35   :  { %1065 = vmatmul.msk.bf16.gmra.mxu2 %vm277_vm1, %v1529_v46  ;;  %296 = vmatmul.bf16.vlgmr.msra.gmra.mxu0 %v1531_v49 }
  0x36   :  { %527 = vmatpush.bf16.msrb.mxu2 %v1290_v44  ;;  %315 = vmatmul.bf16.vlgmr.msra.gmra.mxu1 %v1533_v50  ;;  %v1324_v44 = vld [vmem:[#allocation8 + $0x38] sm:$0xff] }
  0x37   :  { %512 = vmatmul.bf16.vlgmr.msra.gmra.mxu3 %v1531_v49  ;;  %739 = vmatpush.bf16.msrb.mxu1 %v1305_v51  ;;  %v1322_v51 = vld [vmem:[#allocation8 + $0x28] sm:$0xff] }
  0x38   :  { %758 = vmatpush.bf16.msrb.mxu3 %v1313_v47  ;;  %547 = vmatpush.bf16.msrb.mxu0 %v502_v54  ;;  %v565_v47 = vlaneseq }
  0x3a   :  { %528 = vmatpush.bf16.msrb.mxu2 %v1289_v52  ;;  %v1567_v55 = vshrl.u32 %v565_v47, 7 }
  0x3b   :  { %740 = vmatpush.bf16.msrb.mxu1 %v1304_v57 }
  0x3c   :  { %759 = vmatpush.bf16.msrb.mxu3 %v1312_v53  ;;  %548 = vmatpush.bf16.msrb.mxu0 %v1296_v59  ;;  %vm567_vm2 = vcmp.lt.s32.totalorder %v1567_v55, 7  ;;  %vm800_vm3 = vcmp.lt.s32.totalorder %v1567_v55, 6 }
  0x3e   :  { %529 = vmatpush.bf16.msrb.mxu2 %v1288_v58  ;;  %v1321_v58 = vld [vmem:[#allocation8 + $0x20] sm:$0xff] }
  0x3f   :  { %741 = vmatpush.bf16.msrb.mxu1 %v1303_v62 }
  0x40   :  { %760 = vmatpush.bf16.msrb.mxu3 %v1311_v60  ;;  %549 = vmatpush.bf16.msrb.mxu0 %v1295_v0 }
  0x42   :  { %530 = vmatpush.bf16.msrb.mxu2 %v1287_v63 }
  0x43   :  { %742 = vmatpush.bf16.msrb.mxu1 %v1302_v7 }
  0x44   :  { %761 = vmatpush.bf16.msrb.mxu3 %v1310_v1  ;;  %931 = vmatpush.bf16.msra.mxu0 %v1324_v44 }
  0x45   :  { %531 = vmatmul.bf16.vlgmr.msrb.gmra.mxu2 %v1533_v50  ;;  %301 = vmatmul.bf16.gmra.mxu0 %v979_v9 }
  0x46   :  { %782 = vmatpush.bf16.msra.mxu2 %v737_v2  ;;  %320 = vmatmul.bf16.gmra.mxu1 %v983_v10 }
  0x47   :  { %517 = vmatmul.bf16.gmra.mxu3 %v979_v9  ;;  %743 = vmatpush.bf16.msrb.mxu1 %v1301_v12 }
  0x48   :  { %762 = vmatpush.bf16.msrb.mxu3 %v1309_v8  ;;  %932 = vmatpush.bf16.msra.mxu0 %v1323_v45 }
  0x4a   :  { %783 = vmatpush.bf16.msra.mxu2 %v1315_v11  ;;  %v1319_v11 = vld [vmem:[#allocation8 + $0x10] sm:$0xff] }
  0x4b   :  { %744 = vmatpush.bf16.msrb.mxu1 %v1300_v15 }
  0x4c   :  { %763 = vmatpush.bf16.msrb.mxu3 %v1308_v13  ;;  %933 = vmatpush.bf16.msra.mxu0 %v1322_v51  ;;  %v834_v51 = vld [vmem:[#allocation9 + $0x8] sm:$0xff] }
  0x4e   :  { %784 = vmatpush.bf16.msra.mxu2 %v1314_v14 }
  0x4f   :  { %745 = vmatpush.bf16.msrb.mxu1 %v1299_v17 }
  0x50   :  { %764 = vmatpush.bf16.msrb.mxu3 %v1307_v16  ;;  %934 = vmatpush.bf16.msra.mxu0 %v1321_v58 }
  0x53   :  { %746 = vmatpush.bf16.msrb.mxu1 %v1298_v19 }
  0x54   :  { %765 = vmatpush.bf16.msrb.mxu3 %v1306_v18  ;;  %935 = vmatpush.bf16.msra.mxu0 %v1320_v6 }
  0x55   :  { %536 = vmatmul.bf16.gmra.mxu2 %v983_v10  ;;  %1142 = vmatmul.msk.bf16.vlgmr.msrb.gmra.mxu0 %vm277_vm1, %v1525_v21 }
  0x56   :  { %747 = vmatmul.bf16.vlgmr.msrb.gmra.mxu1 %v1531_v49 }
  0x57   :  { %766 = vmatmul.bf16.vlgmr.msrb.gmra.mxu3 %v1533_v50 }
  0x58   :  { %936 = vmatpush.bf16.msra.mxu0 %v1319_v11 }
  0x65   :  { %1220 = vmatmul.msk.bf16.vlgmr.msra.gmra.mxu2 %vm277_vm1, %v1525_v21  ;;  %1143 = vmatmul.msk.bf16.gmra.mxu0 %vm277_vm1, %v1529_v46 }
  0x66   :  { %752 = vmatmul.bf16.gmra.mxu1 %v979_v9 }
  0x67   :  { %771 = vmatmul.bf16.gmra.mxu3 %v983_v10 }
  0x75   :  { %1221 = vmatmul.msk.bf16.gmra.mxu2 %vm277_vm1, %v1529_v46 }
  0xa8   :  { %v335_v20 = vpop.f32.mrf.mxu2 }
  0xb0   :  { %v1553_v22 = vpop.f32.mrf.mxu2 }
  0xb2   :  { %v297_v23 = vpop.f32.mrf.mxu0 }
  0xb3   :  { %v316_v24 = vpop.f32.mrf.mxu1 }
  0xb4   :  { %v317_v63 = vadd.f32 %v316_v24, %v297_v23  ;;  %v1336_v23 = vld [vmem:[%s1608_s2] ss:$0 sm:$0xff] }
  0xb6   :  { %v336_v10 = vadd.f32 %v335_v20, %v317_v63 }
  0xb8   :  { %v1555_v25 = vpop.f32.mrf.mxu2 }
  0xba   :  { %v513_v26 = vpop.f32.mrf.mxu3  ;;  %v299_v27 = vpop.f32.mrf.mxu0 }
  0xbb   :  { %v318_v21 = vpop.f32.mrf.mxu1 }
  0xbc   :  { %v319_v15 = vadd.f32 %v318_v21, %v299_v27 }
  0xc0   :  { %v1557_v28 = vpop.f32.mrf.mxu2 }
  0xc2   :  { %v515_v29 = vpop.f32.mrf.mxu3  ;;  %v1559_v30 = vpop.f32.mrf.mxu0 }
  0xc3   :  { %v1561_v33 = vpop.f32.mrf.mxu1 }
  0xc8   :  { %v532_v31 = vpop.f32.mrf.mxu2 }
  0xc9   :  { %v533_v52 = vadd.f32 %v532_v31, %v513_v26  ;;  %v1318_v26 = vld [vmem:[#allocation8 + $0x8] sm:$0xff] }
  0xca   :  { %v518_v32 = vpop.f32.mrf.mxu3  ;;  %v1563_v34 = vpop.f32.mrf.mxu0  ;;  %937 = vmatpush.bf16.msra.mxu0 %v1318_v26 }
  0xcb   :  { %v1565_v37 = vpop.f32.mrf.mxu1 }
  0xd0   :  { %v534_v35 = vpop.f32.mrf.mxu2 }
  0xd1   :  { %v535_v50 = vadd.f32 %v534_v35, %v515_v29 }
  0xd2   :  { %v520_v36 = vpop.f32.mrf.mxu3  ;;  %v551_v38 = vpop.f32.mrf.mxu0 }
  0xd3   :  { %v748_v40 = vpop.f32.mrf.mxu1  ;;  %v552_v57 = vadd.f32 %v551_v38, %v533_v52 }
  0xd5   :  { %v561_v1 = vrot.slane %v552_v57, 1 }
  0xd8   :  { %v537_v39 = vpop.f32.mrf.mxu2 }
  0xd9   :  { %v538_v59 = vadd.f32 %v537_v39, %v518_v32  ;;  %v338_v32 = vadd.f32 %v1553_v22, %v319_v15  ;;  %v1317_v39 = vld [vmem:[#allocation8] sm:$0xff] }
  0xda   :  { %v767_v41 = vpop.f32.mrf.mxu3  ;;  %v553_v43 = vpop.f32.mrf.mxu0  ;;  %938 = vmatpush.bf16.msra.mxu0 %v1317_v39 }
  0xdb   :  { %v750_v46 = vpop.f32.mrf.mxu1  ;;  %v554_v53 = vadd.f32 %v553_v43, %v535_v50  ;;  %v768_v54 = vadd.f32 %v767_v41, %v748_v40  ;;  %v324_v43 = vadd.f32 %v1565_v37, %v1563_v34  ;;  %v833_v50 = vld [vmem:[#allocation9] sm:$0xff] }
  0xdd   :  { %v562_v60 = vrot.slane %v554_v53, 1 }
  0xdf   :  { %v570_v7 = vsel %vm567_vm2, %v561_v1, %v562_v60 }
  0xe0   :  { %v539_v42 = vpop.f32.mrf.mxu2  ;;  %v576_v16 = vadd.f32 %v570_v7, %v336_v10 }
  0xe1   :  { %v540_v18 = vadd.f32 %v539_v42, %v520_v36  ;;  %v322_v42 = vadd.f32 %v1561_v33, %v1559_v30  ;;  %v343_v33 = vadd.f32 %v1557_v28, %v324_v43 }
  0xe2   :  { %v769_v48 = vpop.f32.mrf.mxu3  ;;  %v556_v56 = vpop.f32.mrf.mxu0 }
  0xe3   :  { %v770_v61 = vadd.f32 %v769_v48, %v750_v46  ;;  %v557_v2 = vadd.f32 %v556_v56, %v538_v59  ;;  %v753_v4 = vpop.f32.mrf.mxu1  ;;  %v341_v30 = vadd.f32 %v1555_v25, %v322_v42 }
  0xe5   :  { %v563_v12 = vrot.slane %v557_v2, 1 }
  0xe7   :  { %v569_v20 = vsel %vm567_vm2, %v562_v60, %v563_v12 }
  0xe8   :  { %v786_v49 = vpop.f32.mrf.mxu2  ;;  %v577_v27 = vadd.f32 %v569_v20, %v338_v32 }
  0xe9   :  { %v1569_v62 = vadd.f32 %v786_v49, %v768_v54 }
  0xea   :  { %v772_v5 = vpop.f32.mrf.mxu3  ;;  %v558_v17 = vpop.f32.mrf.mxu0 }
  0xeb   :  { %v796_v8 = vrot.slane %v1569_v62, 2  ;;  %v773_v13 = vadd.f32 %v772_v5, %v753_v4  ;;  %v559_v29 = vadd.f32 %v558_v17, %v540_v18  ;;  %v755_v38 = vpop.f32.mrf.mxu1 }
  0xed   :  { %v564_v40 = vrot.slane %v559_v29, 1 }
  0xef   :  { %v568_v48 = vsel %vm567_vm2, %v563_v12, %v564_v40  ;;  %v571_v49 = vsel %vm567_vm2, %v564_v40, %v561_v1 }
  0xf0   :  { %v788_v0 = vpop.f32.mrf.mxu2  ;;  %v578_v53 = vadd.f32 %v568_v48, %v341_v30  ;;  %v579_v54 = vadd.f32 %v571_v49, %v343_v33 }
  0xf1   :  { %v789_v3 = vadd.f32 %v788_v0, %v770_v61 }
  0xf2   :  { %v774_v36 = vpop.f32.mrf.mxu3 }
  0xf3   :  { %v797_v9 = vrot.slane %v789_v3, 2  ;;  %v775_v45 = vadd.f32 %v774_v36, %v755_v38 }
  0xf5   :  { %v803_v14 = vsel %vm800_vm3, %v796_v8, %v797_v9 }
  0xf6   :  { %v809_v19 = vadd.f32 %v803_v14, %v576_v16 }
  0xf8   :  { %v791_v24 = vpop.f32.mrf.mxu2  ;;  %v825_v21 = vadd.f32 %v1336_v23, %v809_v19 }
  0xf9   :  { %v792_v31 = vadd.f32 %v791_v24, %v773_v13  ;;  %v1337_v24 = vld [vmem:[%s1610_s4] ss:$0 sm:$0xff] }
  0xfa   :  { %v829_v22 = vmax.f32 %v825_v21, 0.0 }
  0xfb   :  { %v798_v35 = vrot.slane %v792_v31, 2 }
  0xfc   :  { %v835_v56 = vmul.f32 %v833_v50, %v829_v22 }
  0xfd   :  { %v802_v41 = vsel %vm800_vm3, %v797_v9, %v798_v35 }
  0xfe   :  { %v810_v44 = vadd.f32 %v802_v41, %v577_v27 }
 0x100   :  { %v826_v46 = vadd.f32 %v1336_v23, %v810_v44  ;;  %v793_v47 = vpop.f32.mrf.mxu2 }
 0x101   :  { %v794_v52 = vadd.f32 %v793_v47, %v775_v45 }
 0x102   :  { %v830_v34 = vmax.f32 %v826_v46, 0.0 }
 0x103   :  { %v799_v37 = vrot.slane %v794_v52, 2 }
 0x104   :  { %v836_v57 = vmul.f32 %v834_v51, %v830_v34 }
 0x105   :  { %v801_v58 = vsel %vm800_vm3, %v798_v35, %v799_v37  ;;  %v804_v59 = vsel %vm800_vm3, %v799_v37, %v796_v8 }
 0x106   :  { %v839_v60 = vmax.f32 %v835_v56, %v836_v57  ;;  %v811_v61 = vadd.f32 %v801_v58, %v578_v53  ;;  %v812_v62 = vadd.f32 %v804_v59, %v579_v54 }
 0x108   :  { %v840_v63 = vrot.slane %v839_v60, 4  ;;  %v827_v0 = vadd.f32 %v1336_v23, %v811_v61  ;;  %v828_v25 = vadd.f32 %v1336_v23, %v812_v62 }
 0x10a   :  { %v841_v1 = vmax.f32 %v839_v60, %v840_v63  ;;  %v831_v28 = vmax.f32 %v827_v0, 0.0  ;;  %v832_v2 = vmax.f32 %v828_v25, 0.0 }
 0x10c   :  { %v842_v3 = vrot.slane %v841_v1, 2  ;;  %v837_v4 = vmul.f32 %v833_v50, %v831_v28  ;;  %v838_v5 = vmul.f32 %v834_v51, %v832_v2 }
 0x10e   :  { %v846_v6 = vmax.f32 %v837_v4, %v838_v5  ;;  %v843_v7 = vmax.f32 %v841_v1, %v842_v3 }
 0x110   :  { %v847_v9 = vrot.slane %v846_v6, 4  ;;  %v844_v11 = vrot.slane %v843_v7, 1 }
 0x112   :  { %v848_v10 = vmax.f32 %v846_v6, %v847_v9  ;;  %v845_v55 = vmax.f32 %v843_v7, %v844_v11 }
 0x114   :  { %v849_v12 = vrot.slane %v848_v10, 2  ;;  %v853_v15 = vpack.c.bf16 %v845_v55, %v845_v55 }
 0x116   :  { %v850_v8 = vmax.f32 %v848_v10, %v849_v12  ;;  %v877_v17 = vunpack.c.l.b16 %v853_v15 }
 0x118   :  { %v851_v13 = vrot.slane %v850_v8, 1 }
 0x11a   :  { %v852_v14 = vmax.f32 %v850_v8, %v851_v13 }
 0x11c   :  { %v854_v16 = vpack.c.bf16 %v852_v14, %v852_v14 }
 0x11e   :  { %v878_v18 = vunpack.c.l.b16 %v854_v16 }
 0x120   :  { %v880_v19 = vsel %vm879_vm4, %v878_v18, %v877_v17 }
 0x121   :  { %v881_v23 = vpack.c.b16 %v880_v19, %v880_v19 }
 0x123   :  { %939 = vmatmul.bf16.vlgmr.msra.gmra.mxu0 %v881_v23 }
 0x1a0   :  { %v940_v26 = vpop.f32.mrf.mxu0 }
 0x1a1   :  { %v941_v20 = vadd.f32 %v1337_v24, %v940_v26 }
 0x1a3   :  { %944 = vst [vmem:[#allocation11] sm:$0x3] %v941_v20 }
 0x1a4   :  { %955 = dma.vmem_to_hbm [thread:$0]  %s951_s23, 32, %s953_s26, [#allocation5]  }
 0x1a8   :  { %v942_v29 = vpop.f32.mrf.mxu0 }
 0x1a9   :  { %1464 = dma.done.wait [#allocation5], 32  }
 0x1aa   :  { %1465 = vsyncadd [#allocation5], 4294967264 }
 0x1ab   :  { %960 = vsyncpa [#allocation4], 1 }
 0x1ac   :  { %961 = vsyncpa [#allocation7], 1 }
 0x1ad   :  { %962 = vsyncpa [#allocation10], 1 }
 0x1ae   :  { %963 = vsyncpa [#allocation5], 1 }

</bundles_post_ra>
